<compile_context>
chip_gen: v7x
topology: tpu7x:2x2x1
jax: 0.10.0
libtpu: 0.0.40
codegen_flags: <defaults>
</compile_context>

<pallas_src>
import jax
import jax.numpy as jnp
from jax.experimental import pallas as pl
from jax.experimental.pallas import tpu as pltpu


def _cdiv(a, b):
    return -(-a // b)


def _rup(a, b):
    return _cdiv(a, b) * b


def _tpu_num_cores():
    """Best-effort TensorCores-per-device (2 on megacore chips, else 1)."""
    try:
        info = pltpu.get_tpu_info()
        for name in ("num_cores", "core_count", "num_tensorcores",
                     "tensor_cores_per_chip", "num_tensor_cores"):
            v = getattr(info, name, None)
            if isinstance(v, int) and v > 0:
                return v
    except Exception:
        pass
    try:
        kind = jax.devices()[0].device_kind.lower()
        if "v4" in kind or "v7" in kind or "7x" in kind:
            return 2
    except Exception:
        pass
    return 1


def _tpu_vmem_bytes():
    try:
        info = pltpu.get_tpu_info()
        v = getattr(info, "vmem_capacity_bytes", None)
        if isinstance(v, int) and v > 0:
            return v
    except Exception:
        pass
    return None


def _vanilla_attend_kernel(s_ref, t_ref, w1_ref, b1_ref, w2_ref, out_ref):
    TB, L, E = t_ref.shape          # one tile = TB batch elements
    H = w1_ref.shape[-1]            # hidden width of the first Linear (32)

    # Single lane-dense first-layer matmul: seqs (TB*L, 4E) bf16 @ W1 (4E, H)
    # bf16, f32 accumulation on the MXU (K=128 exactly fills v5e's MXU).
    h1 = jnp.dot(s_ref[...], w1_ref[...], preferred_element_type=jnp.float32)
    h1 = jnp.maximum(h1 + b1_ref[...], 0.0)                         # (TB*L, H)

    # Gate projection (N=1): VPU broadcast-multiply + lane reduction with
    # keepdims, so L stays on sublanes all the way through the softmax and
    # the final broadcast (no lane<->sublane relayouts).
    h1r = h1.reshape(TB, L, H)                                       # free for L=8
    gates = jnp.sum(h1r * w2_ref[...][None], axis=-1, keepdims=True)  # (TB, L, 1)

    # Softmax over the sequence axis (axis=1, sublanes), all f32.
    m = jnp.max(gates, axis=1, keepdims=True)                        # (TB, 1, 1)
    e = jnp.exp(gates - m)
    denom = jnp.sum(e, axis=1, keepdims=True)
    p_attn = e * pl.reciprocal(denom, approx=True)                   # (TB, L, 1)

    # output[b] = sum_l target[b, l, :] * p_attn[b, l]
    out_ref[...] = jnp.sum(t_ref[...] * p_attn, axis=1).astype(out_ref.dtype)


def vanilla_attend(target, info, w1, b1, w2, b2, *, tb=None):
    """target, info: (B, L, E) float32. Returns (B, E) float32."""
    del b2  # softmax is invariant to the gate bias -> exact no-op
    B, L, E = target.shape
    assert info.shape == (B, L, E)
    F = 4 * E
    H = w1.shape[1]
    assert w1.shape == (F, H)

    # Fused, lane-dense matmul input built once in the wrapper (one fused XLA
    # elementwise/concat op); shipped bf16, accumulated f32 in the kernel.
    seqs = jnp.concatenate(
        [info, target, info * target, info - target], axis=-1
    ).astype(jnp.bfloat16)                                           # (B, L, 4E)

    num_cores = _tpu_num_cores()
    vmem_cap = _tpu_vmem_bytes()
    # Explicit scoped-VMEM limit: defaults are only 16/32 MiB on v5e/v6e;
    # keep headroom below physical (64 MiB per core) on v7x.
    if vmem_cap:
        vmem_limit = max(32 << 20, min(96 << 20, int(vmem_cap) - (8 << 20)))
    else:
        vmem_limit = 64 << 20
    data_budget = min(24 << 20, vmem_limit - (8 << 20))

    if tb is None:
        # Amortize the ~0.35us/step overhead: target ~4096 MXU rows per step...
        tb = max(8, 4096 // max(L, 1))
        # ...capped so 2x-buffered inputs + f32 temporaries (with lane padding
        # to 128 and f32/bf16 sublane packing) fit the VMEM budget.
        lanes_f = _rup(F, 128)
        lanes_e = _rup(E, 128)
        lanes_h = _rup(H, 128)
        lp = _rup(L, 8)
        per_row = (2 * (L * lanes_f * 2 + lp * lanes_e * 4)   # 2x-buffered inputs
                   + 2 * lanes_e * 4                          # 2x-buffered output
                   + 2 * lp * lanes_h * 4                     # h1 / gate temporaries
                   + 2 * lp * lanes_e * 4)                    # weighted-sum temporaries
        tb = min(tb, max(8, data_budget // per_row))
    # tb multiple of 8 keeps every BlockSpec's second-minor dim (8,128)-legal.
    tb = max(8, _rup(min(tb, _rup(B, 8)), 8))
    n_blocks = _cdiv(B, tb)

    # Megacore (v7x): keep the parallel batch grid a multiple of the core
    # count when there is enough batch to split; single-core chips (v5e/v6e)
    # keep the minimum number of steps.
    if num_cores > 1 and B > 8:
        want = _rup(max(n_blocks, num_cores), num_cores)
        tb2 = _rup(_cdiv(B, want), 8)
        nb2 = _cdiv(B, tb2)
        if nb2 % num_cores == 0:
            tb, n_blocks = tb2, nb2

    Bp = n_blocks * tb
    if Bp != B:
        target = jnp.pad(target, ((0, Bp - B), (0, 0), (0, 0)))
        seqs = jnp.pad(seqs, ((0, Bp - B), (0, 0), (0, 0)))
    seqs2d = seqs.reshape(Bp * L, F)                                 # lane-dense rows

    w1_b = w1.astype(jnp.bfloat16)                                   # (4E, H)
    b1_row = b1.reshape(1, H).astype(jnp.float32)
    w2_row = w2.reshape(1, H).astype(jnp.float32)                    # W2 as a row

    out = pl.pallas_call(
        _vanilla_attend_kernel,
        out_shape=jax.ShapeDtypeStruct((Bp, E), jnp.float32),
        grid_spec=pltpu.PrefetchScalarGridSpec(
            num_scalar_prefetch=0,
            grid=(n_blocks,),
            in_specs=[
                pl.BlockSpec((tb * L, F), lambda g: (g, 0)),     # fused seqs (bf16)
                pl.BlockSpec((tb, L, E), lambda g: (g, 0, 0)),   # target (f32)
                pl.BlockSpec((F, H), lambda g: (0, 0)),          # W1 (bf16)
                pl.BlockSpec((1, H), lambda g: (0, 0)),          # b1
                pl.BlockSpec((1, H), lambda g: (0, 0)),          # W2 row
            ],
            out_specs=pl.BlockSpec((tb, E), lambda g: (g, 0)),
        ),
        compiler_params=pltpu.CompilerParams(
            dimension_semantics=("parallel",),
            vmem_limit_bytes=vmem_limit),
    )(seqs2d, target, w1_b, b1_row, w2_row)
    # TODO(synk): pipeline_mode=pl.Buffered(1) on the three grid-invariant
    # weight specs is a tiny (~few KB) win but pipeline_mode support on
    # top-level pallas_call specs varies across JAX versions, so it is skipped
    # to keep compilation safe; Pallas already avoids re-DMA when an
    # index_map does not change.
    # TODO(synk): the optional v6e/v7x block-diagonal first-layer rewrite
    # (M=TB, K=3*L*E, N=L*H) is not applied; revisit only if profiling still
    # shows the vex slot saturated by vmatmul after these changes.
    return out[:B]


def vanilla_attend_ref(target, info, w1, b1, w2, b2):
    """Pure-JAX f32 reference mirroring the PyTorch forward exactly."""
    seqs = jnp.concatenate([info, target, info * target, info - target], axis=-1)
    h1 = jax.nn.relu(seqs @ w1 + b1)
    gates = (h1 @ w2 + b2).squeeze(-1)            # (B, L)
    p_attn = jax.nn.softmax(gates, axis=-1)[..., None]
    return jnp.sum(target * p_attn, axis=1)


if __name__ == "__main__":
    L, E = 8, 32                                   # embedding_size = 32 -> 4*E = 128
    key = jax.random.PRNGKey(0)
    _, _, k_w1, k_b1, k_w2, k_b2 = jax.random.split(key, 6)

    # Linear(4E, 32) and Linear(32, 1); stored as (in, out).
    w1 = jax.random.normal(k_w1, (4 * E, 32), dtype=jnp.float32) * 0.05
    b1 = jax.random.normal(k_b1, (1, 32), dtype=jnp.float32) * 0.05
    w2 = jax.random.normal(k_w2, (32, 1), dtype=jnp.float32) * 0.05
    b2 = jax.random.normal(k_b2, (1, 1), dtype=jnp.float32) * 0.05

    # B=8 exercises the standard path; B=2 the padded tiny-batch path.
    for B in (8, 2):
        k_t, k_i = jax.random.split(jax.random.fold_in(key, B))
        target = jax.random.normal(k_t, (B, L, E), dtype=jnp.float32)
        info = jax.random.normal(k_i, (B, L, E), dtype=jnp.float32)

        out = vanilla_attend(target, info, w1, b1, w2, b2)
        jax.block_until_ready(out)

        ref = vanilla_attend_ref(target, info, w1, b1, w2, b2)
        assert out.shape == (B, E)
        # bf16 matmul input (f32 accumulation) + approx reciprocal -> loosen tol.
        assert jnp.allclose(out, ref, atol=1e-2, rtol=1e-2), \
            f"mismatch vs reference (B={B})"

    print("KERNEL_OK")
</pallas_src>

<mosaic_0001>
module attributes {stable_mosaic.version = 11 : i64} {
  func.func @_vanilla_attend_kernel(%arg0: i32, %arg1: memref<64x128xbf16, #tpu.memory_space<vmem>>, %arg2: memref<8x8x32xf32, #tpu.memory_space<vmem>>, %arg3: memref<128x32xbf16, #tpu.memory_space<vmem>>, %arg4: memref<1x32xf32, #tpu.memory_space<vmem>>, %arg5: memref<1x32xf32, #tpu.memory_space<vmem>>, %arg6: memref<8x32xf32, #tpu.memory_space<vmem>>) attributes {dimension_semantics = [#tpu.dimension_semantics<parallel>], iteration_bounds = array<i64: 1>, scalar_prefetch = 0 : i64, scratch_operands = 0 : i64, tpu.core_type = #tpu.core_type<tc>, window_params = [{transform_indices = @transform_0, window_bounds = array<i64: 64, 128>}, {transform_indices = @transform_1, window_bounds = array<i64: 8, 8, 32>}, {pipeline_mode = #tpu.pipeline_mode<synchronous>, transform_indices = @transform_2, window_bounds = array<i64: 128, 32>}, {pipeline_mode = #tpu.pipeline_mode<synchronous>, transform_indices = @transform_3, window_bounds = array<i64: 1, 32>}, {pipeline_mode = #tpu.pipeline_mode<synchronous>, transform_indices = @transform_4, window_bounds = array<i64: 1, 32>}, {transform_indices = @transform_5, window_bounds = array<i64: 8, 32>}]} {
    %c0 = arith.constant 0 : index
    %c0_0 = arith.constant 0 : index
    %0 = vector.load %arg1[%c0, %c0_0] : memref<64x128xbf16, #tpu.memory_space<vmem>>, vector<64x128xbf16>
    %c0_1 = arith.constant 0 : index
    %c0_2 = arith.constant 0 : index
    %1 = vector.load %arg3[%c0_1, %c0_2] : memref<128x32xbf16, #tpu.memory_space<vmem>>, vector<128x32xbf16>
    %cst = arith.constant dense<0.000000e+00> : vector<64x32xf32>
    %2 = tpu.matmul %0, %1, %cst {dimension_numbers = #tpu.dot_dimension_numbers<[1], [0], [0], [1], [0, 0, 1, 1], [], []>} : vector<64x128xbf16>, vector<128x32xbf16>, vector<64x32xf32> -> vector<64x32xf32>
    %c0_3 = arith.constant 0 : index
    %c0_4 = arith.constant 0 : index
    %3 = vector.load %arg4[%c0_3, %c0_4] : memref<1x32xf32, #tpu.memory_space<vmem>>, vector<1x32xf32>
    %4 = vector.broadcast %3 : vector<1x32xf32> to vector<64x32xf32>
    %5 = arith.addf %2, %4 : vector<64x32xf32>
    %cst_5 = arith.constant 0.000000e+00 : f32
    %6 = vector.broadcast %cst_5 : f32 to vector<64x32xf32>
    %7 = arith.maximumf %5, %6 : vector<64x32xf32>
    %8 = vector.shape_cast %7 : vector<64x32xf32> to vector<8x8x32xf32>
    %c0_6 = arith.constant 0 : index
    %c0_7 = arith.constant 0 : index
    %9 = vector.load %arg5[%c0_6, %c0_7] : memref<1x32xf32, #tpu.memory_space<vmem>>, vector<1x32xf32>
    %10 = vector.shape_cast %9 : vector<1x32xf32> to vector<1x1x32xf32>
    %11 = vector.broadcast %10 : vector<1x1x32xf32> to vector<8x8x32xf32>
    %12 = arith.mulf %8, %11 : vector<8x8x32xf32>
    %cst_8 = arith.constant dense<0.000000e+00> : vector<8x8xf32>
    %13 = vector.multi_reduction <add>, %12, %cst_8 [2] : vector<8x8x32xf32> to vector<8x8xf32>
    %14 = vector.shape_cast %13 : vector<8x8xf32> to vector<8x8x1xf32>
    %cst_9 = arith.constant dense<0xFF800000> : vector<8x1xf32>
    %15 = vector.multi_reduction <maximumf>, %14, %cst_9 [1] : vector<8x8x1xf32> to vector<8x1xf32>
    %16 = vector.shape_cast %15 : vector<8x1xf32> to vector<8x1x1xf32>
    %17 = vector.broadcast %16 : vector<8x1x1xf32> to vector<8x8x1xf32>
    %18 = arith.subf %14, %17 : vector<8x8x1xf32>
    %19 = math.exp %18 : vector<8x8x1xf32>
    %cst_10 = arith.constant dense<0.000000e+00> : vector<8x1xf32>
    %20 = vector.multi_reduction <add>, %19, %cst_10 [1] : vector<8x8x1xf32> to vector<8x1xf32>
    %21 = vector.shape_cast %20 : vector<8x1xf32> to vector<8x1x1xf32>
    %22 = tpu.reciprocal %21 {approx = true} : vector<8x1x1xf32> -> vector<8x1x1xf32>
    %23 = vector.broadcast %22 : vector<8x1x1xf32> to vector<8x8x1xf32>
    %24 = arith.mulf %19, %23 : vector<8x8x1xf32>
    %c0_11 = arith.constant 0 : index
    %c0_12 = arith.constant 0 : index
    %c0_13 = arith.constant 0 : index
    %25 = vector.load %arg2[%c0_11, %c0_12, %c0_13] : memref<8x8x32xf32, #tpu.memory_space<vmem>>, vector<8x8x32xf32>
    %26 = vector.broadcast %24 : vector<8x8x1xf32> to vector<8x8x32xf32>
    %27 = arith.mulf %25, %26 : vector<8x8x32xf32>
    %cst_14 = arith.constant dense<0.000000e+00> : vector<8x32xf32>
    %28 = vector.multi_reduction <add>, %27, %cst_14 [1] : vector<8x8x32xf32> to vector<8x32xf32>
    %c0_15 = arith.constant 0 : index
    %c0_16 = arith.constant 0 : index
    %29 = vector.load %arg6[%c0_15, %c0_16] : memref<8x32xf32, #tpu.memory_space<vmem>>, vector<8x32xf32>
    tpu.vector_store %arg6[%c0_15, %c0_16], %28 {strides = array<i32>} : memref<8x32xf32, #tpu.memory_space<vmem>>, vector<8x32xf32>,
    return
  }
  func.func @transform_0(%arg0: i32) -> (i32, i32) {
    %c0_i32 = arith.constant 0 : i32
    %c0_i32_0 = arith.constant 0 : i32
    return %arg0, %c0_i32 : i32, i32
  }
  func.func @transform_1(%arg0: i32) -> (i32, i32, i32) {
    %c0_i32 = arith.constant 0 : i32
    %c0_i32_0 = arith.constant 0 : i32
    %c0_i32_1 = arith.constant 0 : i32
    return %arg0, %c0_i32, %c0_i32_0 : i32, i32, i32
  }
  func.func @transform_2(%arg0: i32) -> (i32, i32) {
    %c0_i32 = arith.constant 0 : i32
    %c0_i32_0 = arith.constant 0 : i32
    %c0_i32_1 = arith.constant 0 : i32
    return %c0_i32, %c0_i32_0 : i32, i32
  }
  func.func @transform_3(%arg0: i32) -> (i32, i32) {
    %c0_i32 = arith.constant 0 : i32
    %c0_i32_0 = arith.constant 0 : i32
    %c0_i32_1 = arith.constant 0 : i32
    return %c0_i32, %c0_i32_0 : i32, i32
  }
  func.func @transform_4(%arg0: i32) -> (i32, i32) {
    %c0_i32 = arith.constant 0 : i32
    %c0_i32_0 = arith.constant 0 : i32
    %c0_i32_1 = arith.constant 0 : i32
    return %c0_i32, %c0_i32_0 : i32, i32
  }
  func.func @transform_5(%arg0: i32) -> (i32, i32) {
    %c0_i32 = arith.constant 0 : i32
    %c0_i32_0 = arith.constant 0 : i32
    return %arg0, %c0_i32 : i32, i32
  }
}

</mosaic_0001>

<bundles_post_ra>
// kernel: tpu_custom_call.1
= control target key start
LH: loop header
LB: loop body
LE: loop exit
PB: predicated region body
PF: predicated region fallthrough
CT: control target
= control target key end

     0   :  { %10 = vsyncpa [#allocation3], 0  ;;  %s980_s0 = inlined_call_operand.hbm [shape: bf16[64,128], index: 0, kind: input, shape index: {}]   ;;  %s981_s1 = inlined_call_operand.hbm [shape: f32[8,8,32], index: 1, kind: input, shape index: {}]   ;;  %s982_s2 = inlined_call_operand.hbm [shape: bf16[128,32], index: 2, kind: input, shape index: {}]   ;;  %s983_s3 = inlined_call_operand.hbm [shape: f32[1,32], index: 3, kind: input, shape index: {}]   ;;  %s984_s4 = inlined_call_operand.hbm [shape: f32[1,32], index: 4, kind: input, shape index: {}]   ;;  %s985_s5 = inlined_call_operand.hbm [shape: f32[8,32], index: 5, kind: output, shape index: {}]  }
   0x1   :  { %11 = vsyncpa [#allocation6], 0 }
   0x2   :  { %12 = vsyncpa [#allocation9], 0 }
   0x3   :  { %13 = vsyncpa [#allocation4], 0  ;;  %s811_s18 = smov [#allocation5]   ;;  %s671_s22 = scalar_lea.hbm %s981_s1, 1024 }
   0x4   :  { %s31_s19 = sshll.u32 %s811_s18, 4  ;;  %p672_p0 = scmp.ne.s32.totalorder %s981_s1, %s671_s22  ;;  %s32_s19 = int_to_ptr.vmem [resolvable:$true] %s31_s19 }
   0x5   :  { %p675_p1 = scmp.lt.u32.totalorder %s671_s22, %s981_s1 }
   0x7   :  { %p677_p2 = pnand %p675_p1, %p672_p0 }
   0x9   :  { %680 = shalt.err (!%p677_p2)
}
   0xa   :  { %s681_s27 = scalar_lea.vmem %s32_s19, 1024  ;;  %p686_p4 = scmp.lt.s32.totalorder %s32_s19, %s32_s19 }
   0xb   :  { %p682_p3 = scmp.ne.s32.totalorder %s32_s19, %s681_s27  ;;  %p687_p5 = scmp.lt.s32.totalorder %s681_s27, %s681_s27 }
   0xd   :  { %p688_p6 = por %p687_p5, %p686_p4 }
   0xf   :  { %p689_p7 = pnand %p688_p6, %p682_p3 }
  0x11   :  { %692 = shalt.err (!%p689_p7)
}
  0x12   :  { %s812_s28 = smov 128   ;;  %s813_s29 = smov 8  }
  0x13   :  { %37 = dma.hbm_to_vmem [thread:$0]  %s981_s1, 1024, %s32_s19, [#allocation6], %s812_s28, %s812_s28, %s813_s29  }
  0x14   :  { %s814_s7 = smov [#allocation8]   ;;  %s815_s9 = smov [#allocation2]  }
  0x15   :  { %s56_s8 = sshll.u32 %s814_s7, 4  ;;  %s19_s10 = sshll.u32 %s815_s9, 4  ;;  %s57_s8 = int_to_ptr.vmem [resolvable:$true] %s56_s8  ;;  %s20_s10 = int_to_ptr.vmem [resolvable:$true] %s19_s10 }
  0x16   :  { %s693_s13 = scalar_lea.hbm %s983_s3, 16 }
  0x17   :  { %p694_p8 = scmp.ne.s32.totalorder %s983_s3, %s693_s13  ;;  %p697_p9 = scmp.lt.u32.totalorder %s693_s13, %s983_s3 }
  0x19   :  { %p699_p10 = pnand %p697_p9, %p694_p8 }
  0x1b   :  { %702 = shalt.err (!%p699_p10)
}
  0x1c   :  { %s703_s1 = scalar_lea.vmem %s57_s8, 16  ;;  %s707_s18 = scalar_lea.vmem %s57_s8, 32 }
  0x1d   :  { %p704_p11 = scmp.ne.s32.totalorder %s57_s8, %s703_s1  ;;  %p708_p12 = scmp.lt.s32.totalorder %s57_s8, %s57_s8 }
  0x1e   :  { %p709_p13 = scmp.lt.s32.totalorder %s707_s18, %s703_s1 }
  0x20   :  { %p710_p0 = por %p709_p13, %p708_p12 }
  0x22   :  { %p711_p1 = pnand %p710_p0, %p704_p11 }
  0x24   :  { %714 = shalt.err (!%p711_p1)
}
  0x25   :  { %59 = dma.hbm_to_vmem [thread:$0]  %s983_s3, 16, %s57_s8, [#allocation9]  }
  0x26   :  { %s715_s23 = scalar_lea.hbm %s980_s0, 512 }
  0x27   :  { %p716_p2 = scmp.ne.s32.totalorder %s980_s0, %s715_s23  ;;  %p719_p3 = scmp.lt.u32.totalorder %s715_s23, %s980_s0 }
  0x29   :  { %p721_p4 = pnand %p719_p3, %p716_p2 }
  0x2b   :  { %724 = shalt.err (!%p721_p4)
}
  0x2c   :  { %s725_s28 = scalar_lea.vmem %s20_s10, 512  ;;  %p730_p6 = scmp.lt.s32.totalorder %s20_s10, %s20_s10 }
  0x2d   :  { %p726_p5 = scmp.ne.s32.totalorder %s20_s10, %s725_s28  ;;  %p731_p7 = scmp.lt.s32.totalorder %s725_s28, %s725_s28 }
  0x2f   :  { %p732_p8 = por %p731_p7, %p730_p6 }
  0x31   :  { %p733_p9 = pnand %p732_p8, %p726_p5 }
  0x33   :  { %736 = shalt.err (!%p733_p9)
}
  0x34   :  { %s816_s3 = smov 64   ;;  %s817_s29 = smov 4  }
  0x35   :  { %25 = dma.hbm_to_vmem [thread:$0]  %s980_s0, 512, %s20_s10, [#allocation3], %s816_s3, %s816_s3, %s817_s29  }
  0x36   :  { %s818_s7 = smov [#allocation7]   ;;  %s819_s9 = smov [#allocation10]  }
  0x37   :  { %s43_s8 = sshll.u32 %s818_s7, 4  ;;  %s66_s11 = sshll.u32 %s819_s9, 4  ;;  %s44_s8 = int_to_ptr.vmem [resolvable:$true] %s43_s8  ;;  %s67_s11 = int_to_ptr.vmem [resolvable:$true] %s66_s11 }
  0x38   :  { %s737_s14 = scalar_lea.hbm %s982_s2, 1024 }
  0x39   :  { %p738_p10 = scmp.ne.s32.totalorder %s982_s2, %s737_s14  ;;  %p741_p11 = scmp.lt.u32.totalorder %s737_s14, %s982_s2 }
  0x3b   :  { %p743_p12 = pnand %p741_p11, %p738_p10 }
  0x3d   :  { %746 = shalt.err (!%p743_p12)
}
  0x3e   :  { %s747_s0 = scalar_lea.vmem %s44_s8, 1024  ;;  %p752_p0 = scmp.lt.s32.totalorder %s44_s8, %s44_s8 }
  0x3f   :  { %p748_p13 = scmp.ne.s32.totalorder %s44_s8, %s747_s0  ;;  %p753_p1 = scmp.lt.s32.totalorder %s747_s0, %s747_s0 }
  0x41   :  { %p754_p2 = por %p753_p1, %p752_p0 }
  0x43   :  { %p755_p3 = pnand %p754_p2, %p748_p13 }
  0x45   :  { %758 = shalt.err (!%p755_p3)
}
  0x46   :  { %49 = dma.hbm_to_vmem [thread:$0]  %s982_s2, 1024, %s44_s8, [#allocation6], %s816_s3, %s816_s3, %s817_s29  }
  0x47   :  { %s759_s21 = scalar_lea.hbm %s984_s4, 16 }
  0x48   :  { %p760_p4 = scmp.ne.s32.totalorder %s984_s4, %s759_s21  ;;  %p763_p5 = scmp.lt.u32.totalorder %s759_s21, %s984_s4 }
  0x4a   :  { %p765_p6 = pnand %p763_p5, %p760_p4 }
  0x4c   :  { %768 = shalt.err (!%p765_p6)
}
  0x4d   :  { %s769_s26 = scalar_lea.vmem %s67_s11, 16  ;;  %s773_s27 = scalar_lea.vmem %s67_s11, 32 }
  0x4e   :  { %p770_p7 = scmp.ne.s32.totalorder %s67_s11, %s769_s26  ;;  %p774_p8 = scmp.lt.s32.totalorder %s67_s11, %s67_s11 }
  0x4f   :  { %p775_p9 = scmp.lt.s32.totalorder %s773_s27, %s769_s26 }
  0x51   :  { %p776_p10 = por %p775_p9, %p774_p8 }
  0x53   :  { %p777_p11 = pnand %p776_p10, %p770_p7 }
  0x55   :  { %780 = shalt.err (!%p777_p11)
}
  0x56   :  { %69 = dma.hbm_to_vmem [thread:$0]  %s984_s4, 16, %s67_s11, [#allocation9]  }
  0x57   :  { %803 = dma.done.wait [#allocation3], 512  }
  0x58   :  { %804 = vsyncadd [#allocation3], 4294966784 }
  0x59   :  { %805 = dma.done.wait [#allocation6], 2048  }
  0x5a   :  { %806 = vsyncadd [#allocation6], 4294965248 }
  0x5b   :  { %807 = dma.done.wait [#allocation9], 32  }
  0x5c   :  { %808 = vsyncadd [#allocation9], 4294967264  ;;  %v627_v0 = vld [vmem:[#allocation7] sm:$0xff]   ;;  %v628_v1 = vld [vmem:[#allocation7 + $0x8] sm:$0xff]   ;;  %vm277_vm0 = vcmask 261120   ;;  %vm518_vm1 = vcmask 1041409  }
  0x5d   :  { %577 = vmatprep.subr.bf16.mxu0 %v627_v0  ;;  %601 = vmatprep.subr.bf16.mxu1 %v627_v0  ;;  %v629_v2 = vld [vmem:[#allocation7 + $0x10] sm:$0xff]   ;;  %v630_v3 = vld [vmem:[#allocation7 + $0x18] sm:$0xff]   ;;  %v635_v4 = vld [vmem:[#allocation2] sm:$0xff]   ;;  %vm520_vm2 = vcmask 1042434   ;;  %vm522_vm3 = vcmask 1043459   ;;  %vm524_vm4 = vcmask 1044484  }
  0x5e   :  { %578 = vmatpush3.bf16.msra.mxu0 %v627_v0  ;;  %609 = vmatpush3.bf16.msra.mxu1 %v627_v0  ;;  %v637_v5 = vld [vmem:[#allocation2 + $0x10] sm:$0xff]   ;;  %v631_v6 = vld [vmem:[#allocation7 + $0x20] sm:$0xff]   ;;  %v632_v7 = vld [vmem:[#allocation7 + $0x28] sm:$0xff]   ;;  %vm526_vm5 = vcmask 1045509   ;;  %vm528_vm6 = vcmask 1046534   ;;  %s820_s4 = smov [#allocation11]  }
  0x5f   :  { %579 = vmatprep.subr.bf16.mxu0 %v628_v1  ;;  %602 = vmatprep.subr.bf16.mxu1 %v628_v1  ;;  %v633_v8 = vld [vmem:[#allocation7 + $0x30] sm:$0xff]   ;;  %v634_v9 = vld [vmem:[#allocation7 + $0x38] sm:$0xff]   ;;  %v636_v10 = vld [vmem:[#allocation2 + $0x8] sm:$0xff]   ;;  %s540_s3 = sshll.u32 %s820_s4, 4  ;;  %vm530_vm7 = vcmask 1047559   ;;  %s541_s3 = int_to_ptr.vmem [resolvable:$true] %s540_s3 }
  0x60   :  { %593 = vmatprep.mubr.bf16.mxu0 %v635_v4  ;;  %597 = vmatprep.mubr.bf16.mxu1 %v637_v5  ;;  %v638_v11 = vld [vmem:[#allocation2 + $0x18] sm:$0xff]   ;;  %v551_v12 = vld [vmem:[#allocation8] ss:$0 sm:$0xff]  ;;  %v564_v21 = vld [vmem:[#allocation10] ss:$0 sm:$0xff]  ;;  %s781_s29 = scalar_lea.vmem %s541_s3, 128  ;;  %p786_p13 = scmp.lt.s32.totalorder %s541_s3, %s541_s3 }
  0x61   :  { %p782_p12 = scmp.ne.s32.totalorder %s541_s3, %s781_s29  ;;  %p787_p0 = scmp.lt.s32.totalorder %s781_s29, %s781_s29 }
  0x62   :  { %580 = vmatpush3.bf16.msra.mxu0 %v628_v1  ;;  %610 = vmatpush3.bf16.msra.mxu1 %v628_v1 }
  0x63   :  { %581 = vmatprep.subr.bf16.mxu0 %v629_v2  ;;  %603 = vmatprep.subr.bf16.mxu1 %v629_v2  ;;  %p788_p1 = por %p787_p0, %p786_p13 }
  0x65   :  { %p789_p2 = pnand %p788_p1, %p782_p12 }
  0x66   :  { %582 = vmatpush3.bf16.msra.mxu0 %v629_v2  ;;  %611 = vmatpush3.bf16.msra.mxu1 %v629_v2 }
  0x67   :  { %583 = vmatprep.subr.bf16.mxu0 %v630_v3  ;;  %604 = vmatprep.subr.bf16.mxu1 %v630_v3 }
  0x6a   :  { %584 = vmatpush3.bf16.msra.mxu0 %v630_v3  ;;  %612 = vmatpush3.bf16.msra.mxu1 %v630_v3 }
  0x6b   :  { %585 = vmatprep.subr.bf16.mxu0 %v631_v6  ;;  %605 = vmatprep.subr.bf16.mxu1 %v631_v6 }
  0x6e   :  { %586 = vmatpush3.bf16.msra.mxu0 %v631_v6  ;;  %613 = vmatpush3.bf16.msra.mxu1 %v631_v6 }
  0x6f   :  { %587 = vmatprep.subr.bf16.mxu0 %v632_v7  ;;  %606 = vmatprep.subr.bf16.mxu1 %v632_v7 }
  0x72   :  { %588 = vmatpush3.bf16.msra.mxu0 %v632_v7  ;;  %614 = vmatpush3.bf16.msra.mxu1 %v632_v7 }
  0x73   :  { %589 = vmatprep.subr.bf16.mxu0 %v633_v8  ;;  %607 = vmatprep.subr.bf16.mxu1 %v633_v8 }
  0x76   :  { %590 = vmatpush3.bf16.msra.mxu0 %v633_v8  ;;  %615 = vmatpush3.bf16.msra.mxu1 %v633_v8 }
  0x77   :  { %591 = vmatprep.subr.bf16.mxu0 %v634_v9  ;;  %608 = vmatprep.subr.bf16.mxu1 %v634_v9 }
  0x7a   :  { %592 = vmatpush3.bf16.msra.mxu0 %v634_v9  ;;  %616 = vmatpush3.bf16.msra.mxu1 %v634_v9 }
  0x7d   :  { %594 = vmatmul.mubr.bf16.vlgmr.msra.gmra.mrb[0].mxu0 %v636_v10  ;;  %598 = vmatmul.mubr.bf16.vlgmr.msra.gmra.mrb[0].mxu1 %v638_v11 }
 0x150   :  { %v595_v13 = vpop.f32.mrb[0].mxu0  ;;  %v599_v14 = vpop.f32.mrb[0].mxu1 }
 0x151   :  { %v232_v15 = vadd.f32 %v595_v13, %v551_v12  ;;  %v223_v16 = vpop.f32.mrb[1].mxu0  ;;  %v239_v17 = vpop.f32.mrb[1].mxu1  ;;  %v248_v38 = vadd.f32 %v599_v14, %v551_v12 }
 0x152   :  { %v224_v18 = vadd.f32 %v551_v12, %v223_v16  ;;  %v596_v19 = vpop.f32.mrb[2].mxu0  ;;  %v600_v20 = vpop.f32.mrb[2].mxu1  ;;  %v240_v28 = vadd.f32 %v551_v12, %v239_v17 }
 0x153   :  { %v256_v22 = vmax.f32 %v232_v15, 0.0  ;;  %v235_v23 = vadd.f32 %v596_v19, %v551_v12  ;;  %v226_v24 = vpop.f32.mrb[3].mxu0  ;;  %v242_v25 = vpop.f32.mrb[3].mxu1  ;;  %v251_v35 = vadd.f32 %v600_v20, %v551_v12  ;;  %v260_v45 = vmax.f32 %v248_v38, 0.0 }
 0x154   :  { %v254_v26 = vmax.f32 %v224_v18, 0.0  ;;  %v227_v27 = vadd.f32 %v551_v12, %v226_v24  ;;  %v243_v29 = vadd.f32 %v551_v12, %v242_v25  ;;  %v258_v39 = vmax.f32 %v240_v28, 0.0 }
 0x155   :  { %v257_v30 = vmax.f32 %v235_v23, 0.0  ;;  %v271_v31 = vmul.f32 %v564_v21, %v256_v22  ;;  %v261_v43 = vmax.f32 %v251_v35, 0.0  ;;  %v275_v51 = vmul.f32 %v564_v21, %v260_v45 }
 0x156   :  { %v255_v32 = vmax.f32 %v227_v27, 0.0  ;;  %v259_v33 = vmax.f32 %v243_v29, 0.0  ;;  %v269_v34 = vmul.f32 %v564_v21, %v254_v26  ;;  %v273_v47 = vmul.f32 %v564_v21, %v258_v39 }
 0x157   :  { %v284_v36 = vsel %vm277_vm0, %v271_v31, 0.0  ;;  %v272_v37 = vmul.f32 %v564_v21, %v257_v30  ;;  %v276_v49 = vmul.f32 %v564_v21, %v261_v43  ;;  %v296_v53 = vsel %vm277_vm0, %v275_v51, 0.0 }
 0x158   :  { %285 = vadd.xlane.f32.xlu1 %v284_v36  ;;  %v278_v40 = vsel %vm277_vm0, %v269_v34, 0.0  ;;  %v270_v41 = vmul.f32 %v564_v21, %v255_v32  ;;  %v274_v42 = vmul.f32 %v564_v21, %v259_v33  ;;  %v290_v50 = vsel %vm277_vm0, %v273_v47, 0.0 }
 0x159   :  { %279 = vadd.xlane.f32.xlu0 %v278_v40  ;;  %v287_v44 = vsel %vm277_vm0, %v272_v37, 0.0  ;;  %v299_v52 = vsel %vm277_vm0, %v276_v49, 0.0 }
 0x15a   :  { %v281_v46 = vsel %vm277_vm0, %v270_v41, 0.0  ;;  %v293_v48 = vsel %vm277_vm0, %v274_v42, 0.0 }
 0x15c   :  { %288 = vadd.xlane.f32.xlu1 %v287_v44 }
 0x15d   :  { %282 = vadd.xlane.f32.xlu0 %v281_v46 }
 0x160   :  { %294 = vadd.xlane.f32.xlu1 %v293_v48 }
 0x161   :  { %291 = vadd.xlane.f32.xlu0 %v290_v50 }
 0x164   :  { %300 = vadd.xlane.f32.xlu1 %v299_v52 }
 0x165   :  { %297 = vadd.xlane.f32.xlu0 %v296_v53 }
 0x1e5   :  { %v286_v54 = vpop.xlane.xlu1 %285 }
 0x1e6   :  { %v314_v55 = vrot.slane %v286_v54, 4  ;;  %v280_v56 = vpop.xlane.xlu0 %279 }
 0x1e7   :  { %v302_v57 = vrot.slane %v280_v56, 4 }
 0x1e8   :  { %v315_v58 = vmax.f32 %v286_v54, %v314_v55 }
 0x1e9   :  { %v303_v59 = vmax.f32 %v280_v56, %v302_v57  ;;  %v289_v60 = vpop.xlane.xlu1 %288 }
 0x1ea   :  { %v316_v61 = vrot.slane %v315_v58, 2  ;;  %v320_v62 = vrot.slane %v289_v60, 4  ;;  %v283_v63 = vpop.xlane.xlu0 %282 }
 0x1eb   :  { %v304_v0 = vrot.slane %v303_v59, 2  ;;  %v308_v1 = vrot.slane %v283_v63, 4 }
 0x1ec   :  { %v317_v2 = vmax.f32 %v315_v58, %v316_v61  ;;  %v321_v3 = vmax.f32 %v289_v60, %v320_v62 }
 0x1ed   :  { %v305_v4 = vmax.f32 %v303_v59, %v304_v0  ;;  %v309_v5 = vmax.f32 %v283_v63, %v308_v1  ;;  %v295_v6 = vpop.xlane.xlu1 %294 }
 0x1ee   :  { %v318_v7 = vrot.slane %v317_v2, 1  ;;  %v322_v8 = vrot.slane %v321_v3, 2  ;;  %v332_v9 = vrot.slane %v295_v6, 4  ;;  %v292_v10 = vpop.xlane.xlu0 %291 }
 0x1ef   :  { %v306_v11 = vrot.slane %v305_v4, 1  ;;  %v310_v12 = vrot.slane %v309_v5, 2  ;;  %v326_v13 = vrot.slane %v292_v10, 4 }
 0x1f0   :  { %v319_v14 = vmax.f32 %v317_v2, %v318_v7  ;;  %v323_v15 = vmax.f32 %v321_v3, %v322_v8  ;;  %v333_v16 = vmax.f32 %v295_v6, %v332_v9 }
 0x1f1   :  { %v307_v17 = vmax.f32 %v305_v4, %v306_v11  ;;  %v311_v18 = vmax.f32 %v309_v5, %v310_v12  ;;  %v327_v19 = vmax.f32 %v292_v10, %v326_v13  ;;  %v301_v20 = vpop.xlane.xlu1 %300 }
 0x1f2   :  { %v352_v21 = vsub.f32 %v286_v54, %v319_v14  ;;  %v324_v22 = vrot.slane %v323_v15, 1  ;;  %v334_v23 = vrot.slane %v333_v16, 2  ;;  %v344_v24 = vrot.slane %v301_v20, 4  ;;  %v298_v25 = vpop.xlane.xlu0 %297 }
 0x1f3   :  { %v350_v26 = vsub.f32 %v280_v56, %v307_v17  ;;  %v312_v27 = vrot.slane %v311_v18, 1  ;;  %v328_v28 = vrot.slane %v327_v19, 2  ;;  %v338_v29 = vrot.slane %v298_v25, 4 }
 0x1f4   :  { %v362_v30 = vmul.f32 1.442695, %v352_v21  ;;  %v325_v31 = vmax.f32 %v323_v15, %v324_v22  ;;  %v335_v32 = vmax.f32 %v333_v16, %v334_v23  ;;  %v345_v33 = vmax.f32 %v301_v20, %v344_v24 }
 0x1f5   :  { %v358_v34 = vmul.f32 1.442695, %v350_v26  ;;  %v313_v35 = vmax.f32 %v311_v18, %v312_v27  ;;  %v329_v36 = vmax.f32 %v327_v19, %v328_v28  ;;  %v339_v37 = vmax.f32 %v298_v25, %v338_v29 }
 0x1f6   :  { %639 = vpow2.f32 %v362_v30  ;;  %v353_v38 = vsub.f32 %v289_v60, %v325_v31  ;;  %v336_v39 = vrot.slane %v335_v32, 1  ;;  %v346_v40 = vrot.slane %v345_v33, 2 }
 0x1f7   :  { %641 = vpow2.f32 %v358_v34  ;;  %v351_v41 = vsub.f32 %v283_v63, %v313_v35  ;;  %v330_v42 = vrot.slane %v329_v36, 1  ;;  %v340_v43 = vrot.slane %v339_v37, 2 }
 0x1f8   :  { %v364_v44 = vmul.f32 1.442695, %v353_v38  ;;  %v337_v45 = vmax.f32 %v335_v32, %v336_v39  ;;  %v347_v46 = vmax.f32 %v345_v33, %v346_v40 }
 0x1f9   :  { %v360_v47 = vmul.f32 1.442695, %v351_v41  ;;  %v331_v48 = vmax.f32 %v329_v36, %v330_v42  ;;  %v341_v49 = vmax.f32 %v339_v37, %v340_v43 }
 0x1fa   :  { %643 = vpow2.f32 %v364_v44  ;;  %v355_v50 = vsub.f32 %v295_v6, %v337_v45  ;;  %v348_v51 = vrot.slane %v347_v46, 1 }
 0x1fb   :  { %645 = vpow2.f32 %v360_v47  ;;  %v354_v52 = vsub.f32 %v292_v10, %v331_v48  ;;  %v342_v53 = vrot.slane %v341_v49, 1 }
 0x1fc   :  { %v368_v54 = vmul.f32 1.442695, %v355_v50  ;;  %v349_v55 = vmax.f32 %v347_v46, %v348_v51 }
 0x1fd   :  { %v366_v56 = vmul.f32 1.442695, %v354_v52  ;;  %v343_v57 = vmax.f32 %v341_v49, %v342_v53 }
 0x1fe   :  { %647 = vpow2.f32 %v368_v54  ;;  %v357_v58 = vsub.f32 %v301_v20, %v349_v55  ;;  %v440_v54 = vld [vmem:[#allocation5 + $0x10] sm:$0xff] }
 0x1ff   :  { %649 = vpow2.f32 %v366_v56  ;;  %v356_v59 = vsub.f32 %v298_v25, %v343_v57 }
 0x200   :  { %v919_v60 = vpop.eup %639  ;;  %v372_v61 = vmul.f32 1.442695, %v357_v58  ;;  %v438_v58 = vld [vmem:[#allocation5] sm:$0xff] }
 0x201   :  { %v921_v62 = vpop.eup %641  ;;  %v386_v63 = vrot.slane %v919_v60, 4  ;;  %v370_v0 = vmul.f32 1.442695, %v356_v59 }
 0x202   :  { %v374_v1 = vrot.slane %v921_v62, 4  ;;  %651 = vpow2.f32 %v372_v61 }
 0x203   :  { %v387_v2 = vadd.f32 %v919_v60, %v386_v63  ;;  %653 = vpow2.f32 %v370_v0  ;;  %v441_v0 = vld [vmem:[#allocation5 + $0x18] sm:$0xff] }
 0x204   :  { %v926_v3 = vpop.eup %643  ;;  %v375_v4 = vadd.f32 %v921_v62, %v374_v1 }
 0x205   :  { %v929_v5 = vpop.eup %645  ;;  %v388_v6 = vrot.slane %v387_v2, 2  ;;  %v392_v7 = vrot.slane %v926_v3, 4 }
 0x206   :  { %v376_v8 = vrot.slane %v375_v4, 2  ;;  %v380_v9 = vrot.slane %v929_v5, 4 }
 0x207   :  { %v389_v10 = vadd.f32 %v388_v6, %v387_v2  ;;  %v393_v11 = vadd.f32 %v926_v3, %v392_v7  ;;  %v439_v6 = vld [vmem:[#allocation5 + $0x8] sm:$0xff] }
 0x208   :  { %v934_v12 = vpop.eup %647  ;;  %v377_v13 = vadd.f32 %v376_v8, %v375_v4  ;;  %v381_v14 = vadd.f32 %v929_v5, %v380_v9 }
 0x209   :  { %v937_v15 = vpop.eup %649  ;;  %v390_v16 = vrot.slane %v389_v10, 1  ;;  %v394_v17 = vrot.slane %v393_v11, 2  ;;  %v404_v18 = vrot.slane %v934_v12, 4 }
 0x20a   :  { %v378_v19 = vrot.slane %v377_v13, 1  ;;  %v382_v20 = vrot.slane %v381_v14, 2  ;;  %v398_v21 = vrot.slane %v937_v15, 4 }
 0x20b   :  { %v391_v22 = vadd.f32 %v390_v16, %v389_v10  ;;  %v395_v23 = vadd.f32 %v394_v17, %v393_v11  ;;  %v405_v24 = vadd.f32 %v934_v12, %v404_v18 }
 0x20c   :  { %v942_v25 = vpop.eup %651  ;;  %v379_v26 = vadd.f32 %v378_v19, %v377_v13  ;;  %v383_v27 = vadd.f32 %v382_v20, %v381_v14  ;;  %v399_v28 = vadd.f32 %v937_v15, %v398_v21  ;;  %v443_v13 = vld [vmem:[#allocation5 + $0x28] sm:$0xff]  ;;  %v442_v19 = vld [vmem:[#allocation5 + $0x20] sm:$0xff] }
 0x20d   :  { %v945_v29 = vpop.eup %653  ;;  %655 = vrcp.f32 %v391_v22  ;;  %v396_v30 = vrot.slane %v395_v23, 1  ;;  %v406_v31 = vrot.slane %v405_v24, 2  ;;  %v416_v32 = vrot.slane %v942_v25, 4 }
 0x20e   :  { %657 = vrcp.f32 %v379_v26  ;;  %v384_v33 = vrot.slane %v383_v27, 1  ;;  %v400_v34 = vrot.slane %v399_v28, 2  ;;  %v410_v35 = vrot.slane %v945_v29, 4 }
 0x20f   :  { %v397_v36 = vadd.f32 %v396_v30, %v395_v23  ;;  %v407_v37 = vadd.f32 %v406_v31, %v405_v24  ;;  %v417_v38 = vadd.f32 %v942_v25, %v416_v32  ;;  %v445_v30 = vld [vmem:[#allocation5 + $0x38] sm:$0xff] }
 0x210   :  { %v385_v39 = vadd.f32 %v384_v33, %v383_v27  ;;  %v401_v40 = vadd.f32 %v400_v34, %v399_v28  ;;  %v411_v41 = vadd.f32 %v945_v29, %v410_v35  ;;  %v444_v34 = vld [vmem:[#allocation5 + $0x30] sm:$0xff] }
 0x211   :  { %659 = vrcp.f32 %v397_v36  ;;  %v408_v42 = vrot.slane %v407_v37, 1  ;;  %v418_v43 = vrot.slane %v417_v38, 2 }
 0x212   :  { %661 = vrcp.f32 %v385_v39  ;;  %v402_v44 = vrot.slane %v401_v40, 1  ;;  %v412_v45 = vrot.slane %v411_v41, 2 }
 0x213   :  { %v409_v46 = vadd.f32 %v408_v42, %v407_v37  ;;  %v419_v47 = vadd.f32 %v418_v43, %v417_v38 }
 0x214   :  { %v403_v48 = vadd.f32 %v402_v44, %v401_v40  ;;  %v413_v49 = vadd.f32 %v412_v45, %v411_v41 }
 0x215   :  { %v420_v50 = vrot.slane %v419_v47, 1  ;;  %663 = vrcp.f32 %v409_v46 }
 0x216   :  { %665 = vrcp.f32 %v403_v48  ;;  %v414_v51 = vrot.slane %v413_v49, 1 }
 0x217   :  { %v656_v52 = vpop.eup %655  ;;  %v421_v53 = vadd.f32 %v420_v50, %v419_v47 }
 0x218   :  { %v658_v55 = vpop.eup %657  ;;  %v415_v56 = vadd.f32 %v414_v51, %v413_v49  ;;  %v432_v57 = vmul.f32 %v656_v52, %v919_v60 }
 0x219   :  { %v430_v59 = vmul.f32 %v658_v55, %v921_v62  ;;  %667 = vrcp.f32 %v421_v53 }
 0x21a   :  { %669 = vrcp.f32 %v415_v56  ;;  %v448_v61 = vmul.f32 %v440_v54, %v432_v57 }
 0x21b   :  { %v660_v63 = vpop.eup %659  ;;  %v446_v1 = vmul.f32 %v438_v58, %v430_v59 }
 0x21c   :  { %v662_v2 = vpop.eup %661  ;;  %v433_v4 = vmul.f32 %v660_v63, %v926_v3  ;;  %v468_v7 = vsel %vm277_vm0, %v448_v61, 0.0 }
 0x21d   :  { %v431_v8 = vmul.f32 %v662_v2, %v929_v5  ;;  %v454_v9 = vsel %vm277_vm0, %v446_v1, 0.0  ;;  %v469_v60 = vrot.slane %v468_v7, 4 }
 0x21e   :  { %v449_v10 = vmul.f32 %v441_v0, %v433_v4  ;;  %v455_v11 = vrot.slane %v454_v9, 4 }
 0x21f   :  { %v664_v62 = vpop.eup %663  ;;  %v447_v14 = vmul.f32 %v439_v6, %v431_v8  ;;  %v470_v16 = vadd.f32 %v469_v60, %v468_v7 }
 0x220   :  { %v666_v17 = vpop.eup %665  ;;  %v435_v18 = vmul.f32 %v664_v62, %v934_v12  ;;  %v456_v20 = vadd.f32 %v455_v11, %v454_v9  ;;  %v475_v3 = vsel %vm277_vm0, %v449_v10, 0.0 }
 0x221   :  { %v434_v21 = vmul.f32 %v666_v17, %v937_v15  ;;  %v461_v5 = vsel %vm277_vm0, %v447_v14, 0.0  ;;  %v471_v22 = vrot.slane %v470_v16, 2  ;;  %v476_v23 = vrot.slane %v475_v3, 4 }
 0x222   :  { %v451_v24 = vmul.f32 %v443_v13, %v435_v18  ;;  %v457_v26 = vrot.slane %v456_v20, 2  ;;  %v462_v27 = vrot.slane %v461_v5, 4 }
 0x223   :  { %v668_v28 = vpop.eup %667  ;;  %v450_v31 = vmul.f32 %v442_v19, %v434_v21  ;;  %v477_v32 = vadd.f32 %v476_v23, %v475_v3  ;;  %v472_v38 = vadd.f32 %v471_v22, %v470_v16 }
 0x224   :  { %v670_v33 = vpop.eup %669  ;;  %v437_v12 = vmul.f32 %v668_v28, %v942_v25  ;;  %v458_v35 = vadd.f32 %v457_v26, %v456_v20  ;;  %v463_v36 = vadd.f32 %v462_v27, %v461_v5  ;;  %v489_v37 = vsel %vm277_vm0, %v451_v24, 0.0 }
 0x225   :  { %v436_v15 = vmul.f32 %v670_v33, %v945_v29  ;;  %v478_v39 = vrot.slane %v477_v32, 2  ;;  %v482_v40 = vsel %vm277_vm0, %v450_v31, 0.0  ;;  %v490_v46 = vrot.slane %v489_v37, 4 }
 0x226   :  { %v453_v41 = vmul.f32 %v445_v30, %v437_v12  ;;  %v464_v42 = vrot.slane %v463_v36, 2  ;;  %v483_v43 = vrot.slane %v482_v40, 4  ;;  %v459_v47 = vrot.slane %v458_v35, 1 }
 0x227   :  { %v452_v44 = vmul.f32 %v444_v34, %v436_v15  ;;  %v479_v45 = vadd.f32 %v478_v39, %v477_v32  ;;  %v473_v50 = vrot.slane %v472_v38, 1  ;;  %v491_v51 = vadd.f32 %v490_v46, %v489_v37 }
 0x228   :  { %v465_v48 = vadd.f32 %v464_v42, %v463_v36  ;;  %v484_v25 = vadd.f32 %v483_v43, %v482_v40  ;;  %v503_v49 = vsel %vm277_vm0, %v453_v41, 0.0  ;;  %v460_v59 = vadd.f32 %v459_v47, %v458_v35 }
 0x229   :  { %v496_v52 = vsel %vm277_vm0, %v452_v44, 0.0  ;;  %v504_v29 = vrot.slane %v503_v49, 4  ;;  %v480_v54 = vrot.slane %v479_v45, 1  ;;  %v492_v57 = vrot.slane %v491_v51, 2 }
 0x22a   :  { %v466_v53 = vrot.slane %v465_v48, 1  ;;  %v485_v55 = vrot.slane %v484_v25, 2  ;;  %v497_v56 = vrot.slane %v496_v52, 4  ;;  %v474_v1 = vadd.f32 %v473_v50, %v472_v38 }
 0x22b   :  { %v505_v58 = vadd.f32 %v504_v29, %v503_v49  ;;  %v493_v2 = vadd.f32 %v492_v57, %v491_v51  ;;  %v481_v6 = vadd.f32 %v480_v54, %v479_v45 }
 0x22c   :  { %v467_v61 = vadd.f32 %v466_v53, %v465_v48  ;;  %v486_v63 = vadd.f32 %v485_v55, %v484_v25  ;;  %v498_v0 = vadd.f32 %v497_v56, %v496_v52 }
 0x22d   :  { %v506_v4 = vrot.slane %v505_v58, 2  ;;  %v494_v60 = vrot.slane %v493_v2, 1 }
 0x22e   :  { %v487_v7 = vrot.slane %v486_v63, 1  ;;  %v499_v8 = vrot.slane %v498_v0, 2  ;;  %v519_v9 = vsel %vm518_vm1, %v467_v61, %v460_v59 }
 0x22f   :  { %v507_v10 = vadd.f32 %v506_v4, %v505_v58  ;;  %v521_v11 = vsel %vm520_vm2, %v474_v1, %v519_v9  ;;  %v495_v19 = vadd.f32 %v494_v60, %v493_v2 }
 0x230   :  { %v488_v62 = vadd.f32 %v487_v7, %v486_v63  ;;  %v500_v13 = vadd.f32 %v499_v8, %v498_v0  ;;  %v523_v14 = vsel %vm522_vm3, %v481_v6, %v521_v11 }
 0x231   :  { %v508_v16 = vrot.slane %v507_v10, 1 }
 0x232   :  { %v501_v17 = vrot.slane %v500_v13, 1  ;;  %v525_v18 = vsel %vm524_vm4, %v488_v62, %v523_v14 }
 0x233   :  { %v509_v3 = vadd.f32 %v508_v16, %v507_v10  ;;  %v527_v21 = vsel %vm526_vm5, %v495_v19, %v525_v18 }
 0x234   :  { %v502_v20 = vadd.f32 %v501_v17, %v500_v13 }
 0x236   :  { %v529_v5 = vsel %vm528_vm6, %v502_v20, %v527_v21 }
 0x237   :  { %v531_v22 = vsel %vm530_vm7, %v509_v3, %v529_v5 }
 0x238   :  { %533 = vst.msk [vmem:[#allocation11] sm:$0xff] %vm277_vm0, %v531_v22 }
 0x239   :  { %792 = shalt.err (!%p789_p2)
}
 0x23a   :  { %s793_s7 = scalar_lea.hbm %s985_s5, 128 }
 0x23b   :  { %p794_p3 = scmp.ne.s32.totalorder %s985_s5, %s793_s7  ;;  %p797_p4 = scmp.lt.u32.totalorder %s793_s7, %s985_s5 }
 0x23d   :  { %p799_p5 = pnand %p797_p4, %p794_p3 }
 0x23f   :  { %802 = shalt.err (!%p799_p5)
}
 0x240   :  { %543 = dma.vmem_to_hbm [thread:$0]  %s541_s3, 128, %s985_s5, [#allocation4]  }
 0x241   :  { %809 = dma.done.wait [#allocation4], 128  }
 0x242   :  { %810 = vsyncadd [#allocation4], 4294967168 }
 0x243   :  { %547 = vsyncpa [#allocation3], 1 }
 0x244   :  { %548 = vsyncpa [#allocation6], 1 }
 0x245   :  { %549 = vsyncpa [#allocation9], 1 }
 0x246   :  { %550 = vsyncpa [#allocation4], 1 }

</bundles_post_ra>
